<compile_context>
chip_gen: v6e
topology: v6e:2x2x1
jax: 0.10.0
libtpu: 0.0.40
codegen_flags: <defaults>
</compile_context>

<pallas_src>
import jax
import jax.numpy as jnp
from jax import lax
from jax.experimental import pallas as pl
from jax.experimental.pallas import tpu as pltpu


# ---------------------------------------------------------------------------
# Kernels
# ---------------------------------------------------------------------------

def _conv_stats_kernel(p_ref, w_ref, o_ref, stats_ref, acc_ref):
    """Tiled matmul (conv) + per-(row-tile, channel-tile) sum / sum-of-squares."""
    k = pl.program_id(2)

    @pl.when(k == 0)
    def _init():
        acc_ref[...] = jnp.zeros_like(acc_ref)

    acc_ref[...] += jnp.dot(p_ref[...], w_ref[...],
                            preferred_element_type=jnp.float32)

    @pl.when(k == pl.num_programs(2) - 1)
    def _finalize():
        acc = acc_ref[...]
        o_ref[...] = acc.astype(o_ref.dtype)
        s1 = jnp.sum(acc, axis=0, keepdims=True)          # [1, tile_co]
        s2 = jnp.sum(acc * acc, axis=0, keepdims=True)    # [1, tile_co]
        rows = lax.broadcasted_iota(jnp.int32, (8, acc.shape[1]), 0)
        stats_ref[...] = (jnp.where(rows == 0, s1, 0.0) +
                          jnp.where(rows == 1, s2, 0.0))


def _conv_affine_kernel(p_ref, w_ref, sb_ref, o_ref, acc_ref):
    """Tiled matmul (conv) with fused per-channel scale/bias + ReLU (eval mode)."""
    k = pl.program_id(2)

    @pl.when(k == 0)
    def _init():
        acc_ref[...] = jnp.zeros_like(acc_ref)

    acc_ref[...] += jnp.dot(p_ref[...], w_ref[...],
                            preferred_element_type=jnp.float32)

    @pl.when(k == pl.num_programs(2) - 1)
    def _finalize():
        scale = sb_ref[0:1, :]
        bias = sb_ref[1:2, :]
        y = jnp.maximum(acc_ref[...] * scale + bias, 0.0)
        o_ref[...] = y.astype(o_ref.dtype)


def _bn_relu_kernel(y_ref, sb_ref, o_ref):
    """Tiled elementwise BN-apply + ReLU (phase 2 of training-mode BN)."""
    scale = sb_ref[0:1, :]
    bias = sb_ref[1:2, :]
    o_ref[...] = jnp.maximum(y_ref[...] * scale + bias, 0.0).astype(o_ref.dtype)


# ---------------------------------------------------------------------------
# Wrapper
# ---------------------------------------------------------------------------

def _round_up(x, m):
    return (x + m - 1) // m * m


def conv_bn_relu(x_nchw, weight_oihw, gamma, beta, running_mean, running_var,
                 *, eps=1e-3, stride=1, padding=0, training=True,
                 compute_dtype=jnp.bfloat16):
    """Forward of Conv_Bn_Relu.

    x_nchw: [N, Cin, H, W]; weight_oihw: [Cout, Cin, KH, KW].
    `training=True` matches a freshly constructed torch module (batch stats,
    biased variance); eval mode folds running stats into scale/bias.
    """
    N, Cin, H, W = x_nchw.shape
    Cout, Cin_w, KH, KW = weight_oihw.shape
    assert Cin_w == Cin, "groups != 1 not supported"
    out_dtype = x_nchw.dtype

    # ---- NCHW -> NHWC (+ spatial zero padding, like torch Conv2d padding) ----
    x = jnp.transpose(x_nchw, (0, 2, 3, 1))
    if padding:
        x = jnp.pad(x, ((0, 0), (padding, padding), (padding, padding), (0, 0)))
    Hp, Wp = H + 2 * padding, W + 2 * padding
    Ho = (Hp - KH) // stride + 1
    Wo = (Wp - KW) // stride + 1

    # ---- im2col in the wrapper (XLA): [M, KH*KW*Cin], tap-major -------------
    taps = []
    for kh in range(KH):
        for kw in range(KW):
            taps.append(x[:, kh:kh + stride * (Ho - 1) + 1:stride,
                          kw:kw + stride * (Wo - 1) + 1:stride, :])
    patches = jnp.concatenate(taps, axis=-1).reshape(N * Ho * Wo, KH * KW * Cin)

    # OIHW -> [KH*KW*Cin, Cout] (same kh, kw, cin ordering as the patches)
    w2d = jnp.transpose(weight_oihw, (2, 3, 1, 0)).reshape(KH * KW * Cin, Cout)

    M, Kc = patches.shape

    # ---- lane/sublane-dense padded problem + tile sizes ----------------------
    tile_m = min(256, _round_up(M, 8))
    M_pad = _round_up(M, tile_m)
    K_pad = _round_up(Kc, 128)
    tile_k = next(t for t in (512, 384, 256, 128) if K_pad % t == 0)
    Co_pad = _round_up(Cout, 128)
    tile_co = 128

    p_pad = jnp.zeros((M_pad, K_pad), compute_dtype).at[:M, :Kc].set(
        patches.astype(compute_dtype))
    w_pad = jnp.zeros((K_pad, Co_pad), compute_dtype).at[:Kc, :Cout].set(
        w2d.astype(compute_dtype))

    gm = jnp.zeros((Co_pad,), jnp.float32).at[:Cout].set(gamma.astype(jnp.float32))
    bt = jnp.zeros((Co_pad,), jnp.float32).at[:Cout].set(beta.astype(jnp.float32))

    grid = (M_pad // tile_m, Co_pad // tile_co, K_pad // tile_k)
    p_spec = pl.BlockSpec((tile_m, tile_k), lambda i, j, k: (i, k))
    w_spec = pl.BlockSpec((tile_k, tile_co), lambda i, j, k: (k, j))
    o_spec = pl.BlockSpec((tile_m, tile_co), lambda i, j, k: (i, j))
    sb_spec3 = pl.BlockSpec((8, tile_co), lambda i, j, k: (0, j))
    acc_scratch = pltpu.VMEM((tile_m, tile_co), jnp.float32)

    cparams3 = pltpu.CompilerParams(
        dimension_semantics=("parallel", "parallel", "arbitrary"),
        vmem_limit_bytes=32 * 1024 * 1024)
    cparams2 = pltpu.CompilerParams(
        dimension_semantics=("parallel", "parallel"),
        vmem_limit_bytes=32 * 1024 * 1024)

    if training:
        # ---- phase 1: conv matmul + per-tile channel sum / sumsq ------------
        n_mt = M_pad // tile_m
        conv_out, stats = pl.pallas_call(
            _conv_stats_kernel,
            out_shape=(jax.ShapeDtypeStruct((M_pad, Co_pad), jnp.float32),
                       jax.ShapeDtypeStruct((n_mt * 8, Co_pad), jnp.float32)),
            grid_spec=pltpu.PrefetchScalarGridSpec(
                num_scalar_prefetch=0, grid=grid,
                in_specs=[p_spec, w_spec],
                out_specs=(o_spec,
                           pl.BlockSpec((8, tile_co), lambda i, j, k: (i, j))),
                scratch_shapes=[acc_scratch]),
            compiler_params=cparams3,
        )(p_pad, w_pad)

        # ---- tiny cross-tile reduction + scale/bias folding (wrapper) -------
        stats = stats.reshape(n_mt, 8, Co_pad)
        count = jnp.float32(M)                     # padded rows are all-zero
        mean = jnp.sum(stats[:, 0, :], axis=0) / count
        var = jnp.maximum(jnp.sum(stats[:, 1, :], axis=0) / count - mean * mean,
                          0.0)
        scale = gm * lax.rsqrt(var + eps)
        bias = bt - mean * scale
        sb = jnp.zeros((8, Co_pad), jnp.float32).at[0].set(scale).at[1].set(bias)

        # ---- phase 2: tiled elementwise BN apply + ReLU ----------------------
        out2d = pl.pallas_call(
            _bn_relu_kernel,
            out_shape=jax.ShapeDtypeStruct((M_pad, Co_pad), out_dtype),
            grid_spec=pltpu.PrefetchScalarGridSpec(
                num_scalar_prefetch=0,
                grid=(M_pad // tile_m, Co_pad // tile_co),
                in_specs=[pl.BlockSpec((tile_m, tile_co), lambda i, j: (i, j)),
                          pl.BlockSpec((8, tile_co), lambda i, j: (0, j))],
                out_specs=pl.BlockSpec((tile_m, tile_co), lambda i, j: (i, j))),
            compiler_params=cparams2,
        )(conv_out, sb)
    else:
        # ---- eval mode: fold running stats and fuse BN+ReLU into the conv ----
        rm = jnp.zeros((Co_pad,), jnp.float32).at[:Cout].set(
            running_mean.astype(jnp.float32))
        rv = jnp.ones((Co_pad,), jnp.float32).at[:Cout].set(
            running_var.astype(jnp.float32))
        scale = gm * lax.rsqrt(rv + eps)
        bias = bt - rm * scale
        sb = jnp.zeros((8, Co_pad), jnp.float32).at[0].set(scale).at[1].set(bias)

        out2d = pl.pallas_call(
            _conv_affine_kernel,
            out_shape=jax.ShapeDtypeStruct((M_pad, Co_pad), out_dtype),
            grid_spec=pltpu.PrefetchScalarGridSpec(
                num_scalar_prefetch=0, grid=grid,
                in_specs=[p_spec, w_spec, sb_spec3],
                out_specs=o_spec,
                scratch_shapes=[acc_scratch]),
            compiler_params=cparams3,
        )(p_pad, w_pad, sb)

    # lane-dense 2-D slab -> NCHW (wrapper-side plumbing, free XLA reshapes)
    out = out2d[:M, :Cout].reshape(N, Ho, Wo, Cout)
    return jnp.transpose(out, (0, 3, 1, 2))


# ---------------------------------------------------------------------------
# Pure-JAX reference
# ---------------------------------------------------------------------------

def _reference(x_nchw, weight_oihw, gamma, beta, rmean, rvar,
               *, eps, stride, padding, training):
    y = lax.conv_general_dilated(
        x_nchw, weight_oihw, window_strides=(stride, stride),
        padding=[(padding, padding), (padding, padding)],
        dimension_numbers=("NCHW", "OIHW", "NCHW"),
        precision=lax.Precision.HIGHEST)
    if training:
        mean = jnp.mean(y, axis=(0, 2, 3), keepdims=True)
        var = jnp.var(y, axis=(0, 2, 3), keepdims=True)       # biased
    else:
        mean = rmean.reshape(1, -1, 1, 1)
        var = rvar.reshape(1, -1, 1, 1)
    y = gamma.reshape(1, -1, 1, 1) * (y - mean) / jnp.sqrt(var + eps) \
        + beta.reshape(1, -1, 1, 1)
    return jnp.maximum(y, 0.0)


if __name__ == "__main__":
    # Small shapes consistent with the module:
    # Conv_Bn_Relu(in_ch, out_ch, kernel_size=3, stride=1) -> padding defaults to 0.
    N, Cin, Cout, H, W, K = 2, 4, 8, 16, 16, 3
    eps = 1e-3
    stride = 1
    padding = 0

    key = jax.random.PRNGKey(0)
    kx, kw, kg, kb, km, kv = jax.random.split(key, 6)
    x = jax.random.normal(kx, (N, Cin, H, W), jnp.float32)
    weight = jax.random.normal(kw, (Cout, Cin, K, K), jnp.float32) * 0.1
    gamma = 0.5 + jax.random.uniform(kg, (Cout,), jnp.float32)
    beta = jax.random.normal(kb, (Cout,), jnp.float32) * 0.1
    running_mean = jax.random.normal(km, (Cout,), jnp.float32) * 0.1
    running_var = 0.5 + jax.random.uniform(kv, (Cout,), jnp.float32)

    ok = True
    # (training?, matmul compute dtype, tolerance): bf16 is the performance
    # default (f32 accumulation on the MXU); one f32 run exercises that path too.
    for training, cdt, tol in ((True, jnp.bfloat16, 3e-2),
                               (False, jnp.bfloat16, 3e-2),
                               (True, jnp.float32, 3e-2)):
        out = conv_bn_relu(x, weight, gamma, beta, running_mean, running_var,
                           eps=eps, stride=stride, padding=padding,
                           training=training, compute_dtype=cdt)
        out = jax.block_until_ready(out)
        ref = _reference(x, weight, gamma, beta, running_mean, running_var,
                         eps=eps, stride=stride, padding=padding,
                         training=training)
        ok &= bool(jnp.allclose(out, ref, atol=tol, rtol=tol))

    print("KERNEL_OK" if ok else "KERNEL_MISMATCH")
</pallas_src>

<mosaic_0001>
module attributes {stable_mosaic.version = 11 : i64} {
  func.func @_conv_stats_kernel(%arg0: i32, %arg1: i32, %arg2: i32, %arg3: memref<256x128xbf16, #tpu.memory_space<vmem>>, %arg4: memref<128x128xbf16, #tpu.memory_space<vmem>>, %arg5: memref<256x128xf32, #tpu.memory_space<vmem>>, %arg6: memref<8x128xf32, #tpu.memory_space<vmem>>, %arg7: memref<256x128xf32, #tpu.memory_space<vmem>>) attributes {dimension_semantics = [#tpu.dimension_semantics<parallel>, #tpu.dimension_semantics<parallel>, #tpu.dimension_semantics<arbitrary>], iteration_bounds = array<i64: 2, 1, 1>, scalar_prefetch = 0 : i64, scratch_operands = 1 : i64, tpu.core_type = #tpu.core_type<tc>, window_params = [{transform_indices = @transform_0, window_bounds = array<i64: 256, 128>}, {transform_indices = @transform_1, window_bounds = array<i64: 128, 128>}, {transform_indices = @transform_2, window_bounds = array<i64: 256, 128>}, {transform_indices = @transform_3, window_bounds = array<i64: 8, 128>}]} {
    %c0_i32 = arith.constant 0 : i32
    %0 = arith.cmpi eq, %arg2, %c0_i32 : i32
    %1 = arith.extui %0 : i1 to i32
    %c0_i32_0 = arith.constant 0 : i32
    %2 = arith.cmpi ne, %1, %c0_i32_0 : i32
    scf.if %2 {
      %cst_10 = arith.constant 0.000000e+00 : f32
      %12 = vector.broadcast %cst_10 : f32 to vector<256x128xf32>
      %c0_11 = arith.constant 0 : index
      %c0_12 = arith.constant 0 : index
      %13 = vector.load %arg7[%c0_11, %c0_12] : memref<256x128xf32, #tpu.memory_space<vmem>>, vector<256x128xf32>
      tpu.vector_store %arg7[%c0_11, %c0_12], %12 {strides = array<i32>} : memref<256x128xf32, #tpu.memory_space<vmem>>, vector<256x128xf32>,
    } else {
    }
    %c0 = arith.constant 0 : index
    %c0_1 = arith.constant 0 : index
    %3 = vector.load %arg7[%c0, %c0_1] : memref<256x128xf32, #tpu.memory_space<vmem>>, vector<256x128xf32>
    %c0_2 = arith.constant 0 : index
    %c0_3 = arith.constant 0 : index
    %4 = vector.load %arg3[%c0_2, %c0_3] : memref<256x128xbf16, #tpu.memory_space<vmem>>, vector<256x128xbf16>
    %c0_4 = arith.constant 0 : index
    %c0_5 = arith.constant 0 : index
    %5 = vector.load %arg4[%c0_4, %c0_5] : memref<128x128xbf16, #tpu.memory_space<vmem>>, vector<128x128xbf16>
    %cst = arith.constant dense<0.000000e+00> : vector<256x128xf32>
    %6 = tpu.matmul %4, %5, %cst {dimension_numbers = #tpu.dot_dimension_numbers<[1], [0], [0], [1], [0, 0, 1, 1], [], []>} : vector<256x128xbf16>, vector<128x128xbf16>, vector<256x128xf32> -> vector<256x128xf32>
    %7 = arith.addf %3, %6 : vector<256x128xf32>
    %c0_6 = arith.constant 0 : index
    %c0_7 = arith.constant 0 : index
    %8 = vector.load %arg7[%c0_6, %c0_7] : memref<256x128xf32, #tpu.memory_space<vmem>>, vector<256x128xf32>
    tpu.vector_store %arg7[%c0_6, %c0_7], %7 {strides = array<i32>} : memref<256x128xf32, #tpu.memory_space<vmem>>, vector<256x128xf32>,
    %c0_i32_8 = arith.constant 0 : i32
    %9 = arith.cmpi eq, %arg2, %c0_i32_8 : i32
    %10 = arith.extui %9 : i1 to i32
    %c0_i32_9 = arith.constant 0 : i32
    %11 = arith.cmpi ne, %10, %c0_i32_9 : i32
    scf.if %11 {
      %c0_10 = arith.constant 0 : index
      %c0_11 = arith.constant 0 : index
      %12 = vector.load %arg7[%c0_10, %c0_11] : memref<256x128xf32, #tpu.memory_space<vmem>>, vector<256x128xf32>
      %c0_12 = arith.constant 0 : index
      %c0_13 = arith.constant 0 : index
      %13 = vector.load %arg5[%c0_12, %c0_13] : memref<256x128xf32, #tpu.memory_space<vmem>>, vector<256x128xf32>
      tpu.vector_store %arg5[%c0_12, %c0_13], %12 {strides = array<i32>} : memref<256x128xf32, #tpu.memory_space<vmem>>, vector<256x128xf32>,
      %cst_14 = arith.constant dense<0.000000e+00> : vector<128xf32>
      %14 = vector.multi_reduction <add>, %12, %cst_14 [0] : vector<256x128xf32> to vector<128xf32>
      %15 = vector.shape_cast %14 : vector<128xf32> to vector<1x128xf32>
      %16 = arith.mulf %12, %12 : vector<256x128xf32>
      %cst_15 = arith.constant dense<0.000000e+00> : vector<128xf32>
      %17 = vector.multi_reduction <add>, %16, %cst_15 [0] : vector<256x128xf32> to vector<128xf32>
      %18 = vector.shape_cast %17 : vector<128xf32> to vector<1x128xf32>
      %19 = tpu.iota {dimensions = array<i32: 0>} : vector<8x128xi32>
      %c0_i32_16 = arith.constant 0 : i32
      %20 = vector.broadcast %c0_i32_16 : i32 to vector<8x128xi32>
      %21 = arith.cmpi eq, %19, %20 : vector<8x128xi32>
      %cst_17 = arith.constant 0.000000e+00 : f32
      %22 = vector.shape_cast %15 : vector<1x128xf32> to vector<1x128xf32>
      %23 = vector.broadcast %22 : vector<1x128xf32> to vector<8x128xf32>
      %24 = vector.broadcast %cst_17 : f32 to vector<8x128xf32>
      %25 = arith.select %21, %23, %24 : vector<8x128xi1>, vector<8x128xf32>
      %c1_i32 = arith.constant 1 : i32
      %26 = vector.broadcast %c1_i32 : i32 to vector<8x128xi32>
      %27 = arith.cmpi eq, %19, %26 : vector<8x128xi32>
      %cst_18 = arith.constant 0.000000e+00 : f32
      %28 = vector.shape_cast %18 : vector<1x128xf32> to vector<1x128xf32>
      %29 = vector.broadcast %28 : vector<1x128xf32> to vector<8x128xf32>
      %30 = vector.broadcast %cst_18 : f32 to vector<8x128xf32>
      %31 = arith.select %27, %29, %30 : vector<8x128xi1>, vector<8x128xf32>
      %32 = arith.addf %25, %31 : vector<8x128xf32>
      %c0_19 = arith.constant 0 : index
      %c0_20 = arith.constant 0 : index
      %33 = vector.load %arg6[%c0_19, %c0_20] : memref<8x128xf32, #tpu.memory_space<vmem>>, vector<8x128xf32>
      tpu.vector_store %arg6[%c0_19, %c0_20], %32 {strides = array<i32>} : memref<8x128xf32, #tpu.memory_space<vmem>>, vector<8x128xf32>,
    } else {
    }
    return
  }
  func.func @transform_0(%arg0: i32, %arg1: i32, %arg2: i32) -> (i32, i32) {
    %c0_i32 = arith.constant 0 : i32
    return %arg0, %arg2 : i32, i32
  }
  func.func @transform_1(%arg0: i32, %arg1: i32, %arg2: i32) -> (i32, i32) {
    %c0_i32 = arith.constant 0 : i32
    return %arg2, %arg1 : i32, i32
  }
  func.func @transform_2(%arg0: i32, %arg1: i32, %arg2: i32) -> (i32, i32) {
    %c0_i32 = arith.constant 0 : i32
    return %arg0, %arg1 : i32, i32
  }
  func.func @transform_3(%arg0: i32, %arg1: i32, %arg2: i32) -> (i32, i32) {
    %c0_i32 = arith.constant 0 : i32
    return %arg0, %arg1 : i32, i32
  }
}

</mosaic_0001>

<bundles_post_ra>
// kernel: tpu_custom_call.1
= control target key start
LH: loop header
LB: loop body
LE: loop exit
PB: predicated region body
PF: predicated region fallthrough
CT: control target
= control target key end

     0   :  { %9 = vsyncpa [#allocation4], 0  ;;  %s1884_s0 = inlined_call_operand.hbm [shape: bf16[512,128], index: 0, kind: input, shape index: {}]   ;;  %s1885_s1 = inlined_call_operand.hbm [shape: bf16[128,128], index: 1, kind: input, shape index: {}]   ;;  %s1886_s2 = inlined_call_operand.hbm [shape: f32[512,128], index: 2, kind: output, shape index: {0}]   ;;  %s1887_s3 = inlined_call_operand.hbm [shape: f32[16,128], index: 3, kind: output, shape index: {1}]  }
   0x1   :  { %11 = vsyncpa [#allocation4 + $0x1], 0 }
   0x2   :  { %12 = vsyncpa [#allocation7], 0 }
   0x3   :  { %13 = vsyncpa [#allocation5], 0 }
   0x4   :  { %15 = vsyncpa [#allocation5 + $0x1], 0 }
   0x5   :  { %16 = vsyncpa [#allocation10], 0 }
   0x6   :  { %18 = vsyncpa [#allocation10 + $0x1], 0  ;;  %s1529_s12 = smov 0   ;;  %s1531_s13 = smov 0  }
   0x7   :  { %s1533_s14 = smov 0   ;;  %s1535_s15 = smov 0  }
   0x8   :  { %s1537_s16 = smov 0   ;;  %s1539_s17 = smov 0  }
   0x9 LB: > { %s1091_s18 = sadd.s32 4294967295, %s1499_s17   ;;  %s1092_s19 = sadd.s32 4294967294, %s1499_s17   ;;  %s1499_s17 = sphi %s1539_s17, %s24_s17   ;;  %s1495_s16 = sphi %s1537_s16, %s1909_s16   ;;  %s1491_s15 = sphi %s1535_s15, %s1908_s15   ;;  %s1487_s14 = sphi %s1533_s14, %s1907_s14   ;;  %s1483_s13 = sphi %s1531_s13, %s1906_s13   ;;  %s1479_s12 = sphi %s1529_s12, %s1905_s12  }
   0xa   : > { %p65_p0 = scmp.ne.s32.totalorder %s1483_s13, %s1479_s12  ;;  %p1563_p1 = scmp.eq.s32.totalorder %s1091_s18, 0 }
   0xb   : > { %p1567_p2 = scmp.eq.s32.totalorder %s1091_s18, 1  ;;  %p125_p3 = scmp.eq.s32.totalorder %s1092_s19, 1 }
   0xc   : > { %p1573_p4 = por %p1563_p1, %p65_p0  ;;  %p1093_p5 = scmp.ge.s32.totalorder %s1499_s17, 1 }
   0xd   : > { %p1578_p6 = por %p125_p3, %p65_p0  ;;  %p160_p7 = scmp.lt.s32.totalorder %s1499_s17, 3 }
   0xe   : > { %s1893_s22 = scalar_select %p1573_p4, 1, 0 }
   0xf   : > { %s1894_s23 = scalar_select %p1578_p6, 1, 0 }
  0x10   : > { %p1583_p8 = pnand %p1093_p5, %p160_p7  ;;  %s1501_s25 = smov [#allocation6]  }
  0x11   : > { %s176_s26 = sshll.u32 %s1501_s25, 4  ;;  %s43_s28 = sadd.s32 1, %s1495_s16  ;;  %s177_s26 = int_to_ptr.vmem [resolvable:$true] %s176_s26 }
  0x12   : > { %p1235_p9 = pneg %p1583_p8  ;;  %s1342_s29 = scalar_lea.vmem %s177_s26, 1024 }
  0x13   : > { %p1343_p13 = scmp.ne.s32.totalorder %s177_s26, %s1342_s29  ;;  %p1350_p5 = scmp.lt.s32.totalorder %s177_s26, %s177_s26 }
  0x14   : > { %p1592_p11 = pnand %p1235_p9, %p1563_p1  ;;  %p1351_p7 = scmp.lt.s32.totalorder %s1342_s29, %s1342_s29 }
  0x16   : > { %p1333_p12 = pneg %p1592_p11  ;;  %p1352_p6 = por %p1351_p7, %p1350_p5 }
  0x18   : > { %p1345_p0 = pnand %p1343_p13, %p1333_p12 }
  0x1a   : > { %p1346_p3 = pneg %p1345_p0 }
  0x1c   : > { %p1353_p4 = pnand %p1352_p6, %p1346_p3 }
  0x1e   : > { %1356 = shalt.err (!%p1353_p4)
}
  0x1f   : > { %s1889_s30 = smov 64   ;;  %s1890_s4 = smov 4  }
  0x20   : > { %1238 = dma.hbm_to_vmem [thread:$0]  (!%p1592_p11), %s1885_s1, 1024, %s177_s26, [#allocation7], %s1889_s30, %s1889_s30, %s1890_s4  }
  0x21   : > { %p45_p4 = scmp.ge.s32.totalorder %s43_s28, 2  ;;  %s52_s7 = sadd.s32 1, %s1487_s14 }
  0x22   : > { %p59_p6 = scmp.ne.s32.totalorder %s1487_s14, %s1483_s13  ;;  %p60_p9 = scmp.eq.s32.totalorder %s1499_s17, 0 }
  0x23   : > { %s1911_s28 = smov (%p45_p4, %s43_s28), 0  ;;  %p1251_p0 = scmp.lt.s32.totalorder %s1499_s17, 2 }
  0x24   : > { %p1613_p12 = por %p60_p9, %p59_p6  ;;  %p1619_p13 = por %p1567_p2, %p59_p6 }
  0x25   : > { %s47_s10 = ssub.s32 %s1495_s16, %s1911_s28  ;;  %s190_s11 = sand.u32 1, %s1487_s14  }
  0x26   : > { %p50_p11 = scmp.eq.s32.totalorder %s47_s10, 0  ;;  %s1096_s18 = sshll.u32 %s190_s11, 7 }
  0x27   : > { %s1135_s25 = sshll.u32 %s1495_s16, 11  ;;  %s194_s5 = scalar_lea.vmem [#allocation3], %s1096_s18 }
  0x28   : > { %s1628_s19 = scalar_select %p50_p11, %s1487_s14, %s52_s7  }
  0x29   : > { %s201_s29 = scalar_lea.hbm %s1884_s0, %s1135_s25  ;;  %s202_s6 = sshll.u32 %s194_s5, 4  ;;  %s203_s6 = int_to_ptr.vmem [resolvable:$true] %s202_s6 }
  0x2a   : > { %p1636_p2 = pnand %p1251_p0, %p1613_p12  ;;  %s191_s30 = scalar_lea.sflag [#allocation4], %s190_s11 }
  0x2b   : > { %s1370_s10 = scalar_lea.vmem %s203_s6, 2048  ;;  %s1504_s7 = smov [#allocation3]  }
  0x2c   : > { %p1359_p3 = pneg %p1636_p2  ;;  %p1371_p5 = scmp.ne.s32.totalorder %s203_s6, %s1370_s10 }
  0x2d   : > { %s1375_s4 = sshll.u32 %s1504_s7, 4  ;;  %s1376_s4 = int_to_ptr.vmem [resolvable:$false] %s1375_s4 }
  0x2e   : > { %p1373_p7 = pnand %p1371_p5, %p1359_p3  ;;  %s1377_s25 = scalar_lea.vmem %s1376_s4, 4096 }
  0x2f   : > { %p1378_p6 = scmp.lt.s32.totalorder %s203_s6, %s1376_s4  ;;  %p1379_p9 = scmp.lt.s32.totalorder %s1377_s25, %s1370_s10 }
  0x30   : > { %p1374_p4 = pneg %p1373_p7 }
  0x31   : > { %p1380_p11 = por %p1379_p9, %p1378_p6 }
  0x33   : > { %p1381_p10 = pnand %p1380_p11, %p1374_p4 }
  0x35   : > { %1384 = shalt.err (!%p1381_p10)
}
  0x36   : > { %s1900_s8 = smov 4   ;;  %s1901_s18 = smov 64  }
  0x37   : > { %1242 = dma.hbm_to_vmem [thread:$0]  (!%p1636_p2), %s201_s29, 2048, %s203_s6, %s191_s30, %s1901_s18, %s1901_s18, %s1900_s8  }
  0x38   : > { %214 = sbr.rel (%p1583_p8) target bundleno = 398 (0x18e), region = 28  ;;  %s1650_s11 = sand.u32 (!%p1583_p8), 1, %s1483_s13  }
  0x39   : > { %s1100_s4 = sshll.u32 (!%p1583_p8), %s1650_s11, 7  ;;  %s217_s26 = scalar_lea.sflag (!%p1583_p8), [#allocation4], %s1650_s11 }
  0x3a   : > { %s1654_s27 = scalar_lea.vmem (!%p1583_p8), [#allocation3], %s1100_s4  ;;  %p1902_p10 = scmp.ne.s32.totalorder (!%p1583_p8), %s1893_s22, 0 }
  0x3d   : > { %1462 = dma.done.wait (%p1902_p10), %s217_s26, 2048  }
  0x3e   : > { %1464 = vsyncadd (%p1902_p10), %s217_s26, 4294965248 }
  0x3f   : > { %1466 = dma.done.wait (%p1563_p1), [#allocation7], 1024  }
  0x40   : > { %1468 = vsyncadd (%p1563_p1), [#allocation7], 4294966272  ;;  %v1307_v0 = vld [vmem:[#allocation6 + $0x38] sm:$0xff]   ;;  %v1308_v1 = vld [vmem:[#allocation6 + $0x30] sm:$0xff]   ;;  %s1102_s20 = sshll.u32 %s1650_s11, 8  ;;  %s1136_s24 = sshll.u32 %s1491_s15, 12 }
  0x41   : > { %1161 = vmatprep.subr.bf16.mxu0 %v1307_v0  ;;  %1209 = vmatprep.subr.bf16.mxu1 %v1307_v0  ;;  %v1309_v2 = vld [vmem:[#allocation6 + $0x28] sm:$0xff]   ;;  %v1310_v3 = vld [vmem:[#allocation6 + $0x20] sm:$0xff]   ;;  %v1311_v5 = vld [vmem:[#allocation6 + $0x18] sm:$0xff]   ;;  %s1683_s22 = scalar_lea.vmem [#allocation8], %s1102_s20  ;;  %s1760_s6 = scalar_lea.hbm %s1886_s2, %s1136_s24 }
  0x42   : > { %1162 = vmatpush3.bf16.msra.mxu0 %v1307_v0  ;;  %1217 = vmatpush3.bf16.msra.mxu1 %v1307_v0  ;;  %v1315_v4 = vld [vmem:[%s1654_s27] sm:$0xff]   ;;  %v1312_v6 = vld [vmem:[#allocation6 + $0x10] sm:$0xff]   ;;  %v1313_v8 = vld [vmem:[#allocation6 + $0x8] sm:$0xff]   ;;  %s942_s30 = sshll.u32 %s1683_s22, 4  ;;  %s923_s21 = scalar_lea.sflag [#allocation5], %s1650_s11  ;;  %s1762_s30 = int_to_ptr.vmem [resolvable:$true] %s942_s30 }
  0x43   : > { %1163 = vmatprep.subr.bf16.mxu0 %v1308_v1  ;;  %1210 = vmatprep.subr.bf16.mxu1 %v1308_v1  ;;  %v1323_v7 = vld [vmem:[%s1654_s27 + $0x40] sm:$0xff]   ;;  %v1316_v10 = vld [vmem:[%s1654_s27 + $0x8] sm:$0xff]   ;;  %v1317_v12 = vld [vmem:[%s1654_s27 + $0x10] sm:$0xff]   ;;  %s1385_s10 = scalar_lea.vmem %s1762_s30, 4096  ;;  %s1505_s7 = smov [#allocation8]  }
  0x44   : > { %1177 = vmatprep.mubr.bf16.mxu0 %v1315_v4  ;;  %1193 = vmatprep.mubr.bf16.mxu1 %v1323_v7  ;;  %v1314_v9 = vld [vmem:[#allocation6] sm:$0xff]   ;;  %v1324_v11 = vld [vmem:[%s1654_s27 + $0x48] sm:$0xff]   ;;  %v1325_v13 = vld [vmem:[%s1654_s27 + $0x50] sm:$0xff]   ;;  %p1386_p1 = scmp.ne.s32.totalorder %s1762_s30, %s1385_s10  ;;  %s1389_s25 = sshll.u32 %s1505_s7, 4  ;;  %s1390_s25 = int_to_ptr.vmem [resolvable:$false] %s1389_s25 }
  0x45   : > { %v1318_v14 = vld [vmem:[%s1654_s27 + $0x18] sm:$0xff]   ;;  %v1319_v16 = vld [vmem:[%s1654_s27 + $0x20] sm:$0xff]   ;;  %v1320_v18 = vld [vmem:[%s1654_s27 + $0x28] sm:$0xff]   ;;  %s1391_s8 = scalar_lea.vmem %s1390_s25, 8192  ;;  %p1392_p0 = scmp.lt.s32.totalorder %s1762_s30, %s1390_s25 }
  0x46   : > { %1164 = vmatpush3.bf16.msra.mxu0 %v1308_v1  ;;  %1218 = vmatpush3.bf16.msra.mxu1 %v1308_v1  ;;  %v1326_v15 = vld [vmem:[%s1654_s27 + $0x58] sm:$0xff]   ;;  %v1327_v17 = vld [vmem:[%s1654_s27 + $0x60] sm:$0xff]   ;;  %v1328_v19 = vld [vmem:[%s1654_s27 + $0x68] sm:$0xff]   ;;  %p1387_p8 = pnand %p1386_p1, %p1619_p13  ;;  %p1393_p2 = scmp.lt.s32.totalorder %s1391_s8, %s1385_s10 }
  0x47   : > { %1165 = vmatprep.subr.bf16.mxu0 %v1309_v2  ;;  %1211 = vmatprep.subr.bf16.mxu1 %v1309_v2  ;;  %v1321_v20 = vld [vmem:[%s1654_s27 + $0x30] sm:$0xff]   ;;  %v1322_v22 = vld [vmem:[%s1654_s27 + $0x38] sm:$0xff]  }
  0x48   : > { %v1329_v21 = vld [vmem:[%s1654_s27 + $0x70] sm:$0xff]   ;;  %v1330_v23 = vld [vmem:[%s1654_s27 + $0x78] sm:$0xff]   ;;  %p1388_p12 = pneg %p1387_p8  ;;  %p1394_p3 = por %p1393_p2, %p1392_p0 }
  0x4a   : > { %1166 = vmatpush3.bf16.msra.mxu0 %v1309_v2  ;;  %1219 = vmatpush3.bf16.msra.mxu1 %v1309_v2  ;;  %p1395_p5 = pnand %p1394_p3, %p1388_p12 }
  0x4b   : > { %1167 = vmatprep.subr.bf16.mxu0 %v1310_v3  ;;  %1212 = vmatprep.subr.bf16.mxu1 %v1310_v3 }
  0x4e   : > { %1168 = vmatpush3.bf16.msra.mxu0 %v1310_v3  ;;  %1220 = vmatpush3.bf16.msra.mxu1 %v1310_v3 }
  0x4f   : > { %1169 = vmatprep.subr.bf16.mxu0 %v1311_v5  ;;  %1213 = vmatprep.subr.bf16.mxu1 %v1311_v5 }
  0x52   : > { %1170 = vmatpush3.bf16.msra.mxu0 %v1311_v5  ;;  %1221 = vmatpush3.bf16.msra.mxu1 %v1311_v5 }
  0x53   : > { %1171 = vmatprep.subr.bf16.mxu0 %v1312_v6  ;;  %1214 = vmatprep.subr.bf16.mxu1 %v1312_v6 }
  0x56   : > { %1172 = vmatpush3.bf16.msra.mxu0 %v1312_v6  ;;  %1222 = vmatpush3.bf16.msra.mxu1 %v1312_v6 }
  0x57   : > { %1173 = vmatprep.subr.bf16.mxu0 %v1313_v8  ;;  %1215 = vmatprep.subr.bf16.mxu1 %v1313_v8 }
  0x5a   : > { %1174 = vmatpush3.bf16.msra.mxu0 %v1313_v8  ;;  %1223 = vmatpush3.bf16.msra.mxu1 %v1313_v8 }
  0x5b   : > { %1175 = vmatprep.subr.bf16.mxu0 %v1314_v9  ;;  %1216 = vmatprep.subr.bf16.mxu1 %v1314_v9 }
  0x5e   : > { %1176 = vmatpush3.bf16.msra.mxu0 %v1314_v9  ;;  %1224 = vmatpush3.bf16.msra.mxu1 %v1314_v9 }
  0x61   : > { %1178 = vmatmul.mubr.bf16.vlgmr.msra.gmra.mxu0 %v1316_v10  ;;  %1194 = vmatmul.mubr.bf16.vlgmr.msra.gmra.mxu1 %v1324_v11 }
  0x62   : > { %1181 = vmatprep.mubr.bf16.mxu0 %v1317_v12  ;;  %1197 = vmatprep.mubr.bf16.mxu1 %v1325_v13 }
  0x69   : > { %1182 = vmatmul.mubr.bf16.gmra.mxu0 %v1318_v14  ;;  %1198 = vmatmul.mubr.bf16.gmra.mxu1 %v1326_v15 }
  0x6a   : > { %1185 = vmatprep.mubr.bf16.mxu0 %v1319_v16  ;;  %1201 = vmatprep.mubr.bf16.mxu1 %v1327_v17 }
  0x71   : > { %1186 = vmatmul.mubr.bf16.gmra.mxu0 %v1320_v18  ;;  %1202 = vmatmul.mubr.bf16.gmra.mxu1 %v1328_v19 }
  0x72   : > { %1189 = vmatprep.mubr.bf16.mxu0 %v1321_v20  ;;  %1205 = vmatprep.mubr.bf16.mxu1 %v1329_v21 }
  0x79   : > { %1190 = vmatmul.mubr.bf16.gmra.mxu0 %v1322_v22  ;;  %1206 = vmatmul.mubr.bf16.gmra.mxu1 %v1330_v23 }
 0x121   : > { %v1179_v24 = vpop.f32.mrf.mxu0  ;;  %v1681_v25 = vpop.f32.mrf.mxu1 }
 0x122   : > { %778 = vst [vmem:[%s1683_s22 + $0x10] sm:$0xff] %v1179_v24  ;;  %794 = vst [vmem:[%s1683_s22 + $0x90] sm:$0xff] %v1681_v25  ;;  %v847_v37 = vmul.f32 %v1179_v24, %v1179_v24 }
 0x123   : > { %v550_v26 = vpop.f32.mrf.mxu0  ;;  %v1688_v27 = vpop.f32.mrf.mxu1 }
 0x124   : > { %776 = vst [vmem:[%s1683_s22] sm:$0xff] %v550_v26  ;;  %792 = vst [vmem:[%s1683_s22 + $0x80] sm:$0xff] %v1688_v27  ;;  %v845_v32 = vmul.f32 %v550_v26, %v550_v26 }
 0x125   : > { %v1180_v28 = vpop.f32.mrf.mxu0  ;;  %v1693_v29 = vpop.f32.mrf.mxu1 }
 0x126   : > { %779 = vst [vmem:[%s1683_s22 + $0x18] sm:$0xff] %v1180_v28  ;;  %795 = vst [vmem:[%s1683_s22 + $0x98] sm:$0xff] %v1693_v29  ;;  %v848_v42 = vmul.f32 %v1180_v28, %v1180_v28 }
 0x127   : > { %v553_v30 = vpop.f32.mrf.mxu0  ;;  %v1698_v31 = vpop.f32.mrf.mxu1 }
 0x128   : > { %777 = vst [vmem:[%s1683_s22 + $0x8] sm:$0xff] %v553_v30  ;;  %v808_v33 = vadd.f32 %v553_v30, %v550_v26  ;;  %v846_v34 = vmul.f32 %v553_v30, %v553_v30  ;;  %793 = vst [vmem:[%s1683_s22 + $0x88] sm:$0xff] %v1698_v31 }
 0x129   : > { %v1183_v35 = vpop.f32.mrf.mxu0  ;;  %v1703_v36 = vpop.f32.mrf.mxu1 }
 0x12a   : > { %v809_v38 = vadd.f32 %v1179_v24, %v808_v33  ;;  %v877_v39 = vadd.f32 %v846_v34, %v845_v32  ;;  %782 = vst [vmem:[%s1683_s22 + $0x30] sm:$0xff] %v1183_v35  ;;  %798 = vst [vmem:[%s1683_s22 + $0xb0] sm:$0xff] %v1703_v36  ;;  %v851_v57 = vmul.f32 %v1183_v35, %v1183_v35 }
 0x12b   : > { %v566_v40 = vpop.f32.mrf.mxu0  ;;  %v1708_v41 = vpop.f32.mrf.mxu1 }
 0x12c   : > { %v878_v43 = vadd.f32 %v877_v39, %v847_v37  ;;  %780 = vst [vmem:[%s1683_s22 + $0x20] sm:$0xff] %v566_v40  ;;  %v810_v44 = vadd.f32 %v1180_v28, %v809_v38  ;;  %796 = vst [vmem:[%s1683_s22 + $0xa0] sm:$0xff] %v1708_v41  ;;  %v849_v48 = vmul.f32 %v566_v40, %v566_v40 }
 0x12d   : > { %v1184_v45 = vpop.f32.mrf.mxu0  ;;  %v1713_v46 = vpop.f32.mrf.mxu1 }
 0x12e   : > { %v811_v47 = vadd.f32 %v810_v44, %v566_v40  ;;  %v879_v49 = vadd.f32 %v878_v43, %v848_v42  ;;  %783 = vst [vmem:[%s1683_s22 + $0x38] sm:$0xff] %v1184_v45  ;;  %799 = vst [vmem:[%s1683_s22 + $0xb8] sm:$0xff] %v1713_v46  ;;  %v852_v62 = vmul.f32 %v1184_v45, %v1184_v45 }
 0x12f   : > { %v569_v50 = vpop.f32.mrf.mxu0  ;;  %v1718_v51 = vpop.f32.mrf.mxu1 }
 0x130   : > { %v880_v52 = vadd.f32 %v879_v49, %v849_v48  ;;  %781 = vst [vmem:[%s1683_s22 + $0x28] sm:$0xff] %v569_v50  ;;  %v812_v53 = vadd.f32 %v811_v47, %v569_v50  ;;  %v850_v54 = vmul.f32 %v569_v50, %v569_v50  ;;  %797 = vst [vmem:[%s1683_s22 + $0xa8] sm:$0xff] %v1718_v51 }
 0x131   : > { %v1187_v55 = vpop.f32.mrf.mxu0  ;;  %v1723_v56 = vpop.f32.mrf.mxu1 }
 0x132   : > { %v813_v58 = vadd.f32 %v1183_v35, %v812_v53  ;;  %v881_v59 = vadd.f32 %v880_v52, %v850_v54  ;;  %786 = vst [vmem:[%s1683_s22 + $0x50] sm:$0xff] %v1187_v55  ;;  %802 = vst [vmem:[%s1683_s22 + $0xd0] sm:$0xff] %v1723_v56  ;;  %v855_v13 = vmul.f32 %v1187_v55, %v1187_v55 }
 0x133   : > { %v582_v60 = vpop.f32.mrf.mxu0  ;;  %v1728_v61 = vpop.f32.mrf.mxu1 }
 0x134   : > { %v882_v63 = vadd.f32 %v881_v59, %v851_v57  ;;  %784 = vst [vmem:[%s1683_s22 + $0x40] sm:$0xff] %v582_v60  ;;  %v814_v0 = vadd.f32 %v1184_v45, %v813_v58  ;;  %800 = vst [vmem:[%s1683_s22 + $0xc0] sm:$0xff] %v1728_v61  ;;  %v853_v4 = vmul.f32 %v582_v60, %v582_v60 }
 0x135   : > { %v1188_v1 = vpop.f32.mrf.mxu0  ;;  %v1733_v2 = vpop.f32.mrf.mxu1 }
 0x136   : > { %v815_v3 = vadd.f32 %v814_v0, %v582_v60  ;;  %v883_v5 = vadd.f32 %v882_v63, %v852_v62  ;;  %787 = vst [vmem:[%s1683_s22 + $0x58] sm:$0xff] %v1188_v1  ;;  %803 = vst [vmem:[%s1683_s22 + $0xd8] sm:$0xff] %v1733_v2  ;;  %v856_v18 = vmul.f32 %v1188_v1, %v1188_v1 }
 0x137   : > { %v585_v6 = vpop.f32.mrf.mxu0  ;;  %v1738_v7 = vpop.f32.mrf.mxu1 }
 0x138   : > { %v884_v8 = vadd.f32 %v883_v5, %v853_v4  ;;  %785 = vst [vmem:[%s1683_s22 + $0x48] sm:$0xff] %v585_v6  ;;  %v816_v9 = vadd.f32 %v815_v3, %v585_v6  ;;  %v854_v10 = vmul.f32 %v585_v6, %v585_v6  ;;  %801 = vst [vmem:[%s1683_s22 + $0xc8] sm:$0xff] %v1738_v7 }
 0x139   : > { %v1191_v11 = vpop.f32.mrf.mxu0  ;;  %v1743_v12 = vpop.f32.mrf.mxu1 }
 0x13a   : > { %v817_v14 = vadd.f32 %v1187_v55, %v816_v9  ;;  %v885_v15 = vadd.f32 %v884_v8, %v854_v10  ;;  %790 = vst [vmem:[%s1683_s22 + $0x70] sm:$0xff] %v1191_v11  ;;  %806 = vst [vmem:[%s1683_s22 + $0xf0] sm:$0xff] %v1743_v12 }
 0x13b   : > { %v598_v16 = vpop.f32.mrf.mxu0  ;;  %v1750_v17 = vpop.f32.mrf.mxu1 }
 0x13c   : > { %v886_v19 = vadd.f32 %v885_v15, %v855_v13  ;;  %788 = vst [vmem:[%s1683_s22 + $0x60] sm:$0xff] %v598_v16  ;;  %v818_v20 = vadd.f32 %v1188_v1, %v817_v14  ;;  %804 = vst [vmem:[%s1683_s22 + $0xe0] sm:$0xff] %v1750_v17  ;;  %v857_v24 = vmul.f32 %v598_v16, %v598_v16 }
 0x13d   : > { %v1192_v21 = vpop.f32.mrf.mxu0  ;;  %v1755_v22 = vpop.f32.mrf.mxu1 }
 0x13e   : > { %v819_v23 = vadd.f32 %v818_v20, %v598_v16  ;;  %v887_v26 = vadd.f32 %v886_v19, %v856_v18  ;;  %791 = vst [vmem:[%s1683_s22 + $0x78] sm:$0xff] %v1192_v21  ;;  %807 = vst [vmem:[%s1683_s22 + $0xf8] sm:$0xff] %v1755_v22 }
 0x13f   : > { %v601_v28 = vpop.f32.mrf.mxu0  ;;  %v1767_v30 = vpop.f32.mrf.mxu1 }
 0x140   : > { %v888_v32 = vadd.f32 %v887_v26, %v857_v24  ;;  %789 = vst [vmem:[%s1683_s22 + $0x68] sm:$0xff] %v601_v28  ;;  %v820_v33 = vadd.f32 %v819_v23, %v601_v28  ;;  %v858_v34 = vmul.f32 %v601_v28, %v601_v28  ;;  %805 = vst [vmem:[%s1683_s22 + $0xe8] sm:$0xff] %v1767_v30 }
 0x141   : > { %1398 = shalt.err (!%p1395_p5)
}
 0x142   : > { %s1399_s18 = scalar_lea.hbm %s1760_s6, 4096  ;;  %s1403_s27 = scalar_lea.hbm %s1886_s2, 8192 }
 0x143   : > { %p1400_p7 = scmp.ne.s32.totalorder %s1760_s6, %s1399_s18  ;;  %p1404_p9 = scmp.lt.s32.totalorder %s1760_s6, %s1886_s2 }
 0x144   : > { %p1405_p11 = scmp.lt.s32.totalorder %s1403_s27, %s1399_s18 }
 0x145   : > { %p1401_p4 = pnand %p1400_p7, %p1619_p13 }
 0x146   : > { %p1406_p10 = por %p1405_p11, %p1404_p9 }
 0x147   : > { %p1402_p6 = pneg %p1401_p4 }
 0x149   : > { %p1407_p1 = pnand %p1406_p10, %p1402_p6 }
 0x14b   : > { %1410 = shalt.err (!%p1407_p1)
}
 0x14c   : > { %s1506_s24 = smov 128   ;;  %s1507_s29 = smov 8   ;;  %v859_v35 = vmul.f32 %v1191_v11, %v1191_v11  ;;  %v821_v37 = vadd.f32 %v1191_v11, %v820_v33  ;;  %v889_v38 = vadd.f32 %v888_v32, %v858_v34  ;;  %v860_v39 = vmul.f32 %v1192_v21, %v1192_v21 }
 0x14d   : > { %1231 = dma.vmem_to_hbm [thread:$0]  (%p1619_p13), %s1762_s30, 4096, %s1760_s6, %s923_s21, %s1506_s24, %s1506_s24, %s1507_s29   ;;  %v861_v43 = vmul.f32 %v1688_v27, %v1688_v27  ;;  %v862_v48 = vmul.f32 %v1698_v31, %v1698_v31  ;;  %v863_v50 = vmul.f32 %v1681_v25, %v1681_v25  ;;  %v864_v54 = vmul.f32 %v1693_v29, %v1693_v29 }
 0x14e   : > { %v822_v40 = vadd.f32 %v1192_v21, %v821_v37  ;;  %v890_v42 = vadd.f32 %v889_v38, %v859_v35  ;;  %v865_v58 = vmul.f32 %v1708_v41, %v1708_v41  ;;  %v866_v62 = vmul.f32 %v1718_v51, %v1718_v51  ;;  %s1103_s30 = sshll.u32 %s1650_s11, 3  ;;  %s1132_s5 = sshll.u32 %s1491_s15, 7 }
 0x14f   : > { %v869_v4 = vmul.f32 %v1728_v61, %v1728_v61  ;;  %v870_v8 = vmul.f32 %v1738_v7, %v1738_v7  ;;  %v873_v14 = vmul.f32 %v1750_v17, %v1750_v17  ;;  %v874_v18 = vmul.f32 %v1767_v30, %v1767_v30  ;;  %s251_s6 = scalar_lea.vmem [#allocation9], %s1103_s30  ;;  %s957_s25 = scalar_lea.hbm %s1887_s3, %s1132_s5 }
 0x150   : > { %v891_v44 = vadd.f32 %v890_v42, %v860_v39  ;;  %v823_v45 = vadd.f32 %v822_v40, %v1688_v27  ;;  %v914_v32 = vlaneseq  ;;  %s959_s21 = sshll.u32 %s251_s6, 4  ;;  %s928_s8 = scalar_lea.sflag [#allocation10], %s1650_s11  ;;  %s960_s21 = int_to_ptr.vmem [resolvable:$true] %s959_s21 }
 0x151   : > { %s1411_s18 = scalar_lea.vmem %s960_s21, 128  ;;  %s1508_s4 = smov [#allocation9]  }
 0x152   : > { %v824_v47 = vadd.f32 %v823_v45, %v1698_v31  ;;  %v892_v49 = vadd.f32 %v891_v44, %v861_v43  ;;  %v915_v37 = vshrl.u32 %v914_v32, 7  ;;  %p1412_p8 = scmp.ne.s32.totalorder %s960_s21, %s1411_s18  ;;  %s1415_s26 = sshll.u32 %s1508_s4, 4  ;;  %s1416_s26 = int_to_ptr.vmem [resolvable:$false] %s1415_s26 }
 0x153   : > { %s1417_s15 = scalar_lea.vmem %s1416_s26, 256  ;;  %p1418_p2 = scmp.lt.s32.totalorder %s960_s21, %s1416_s26 }
 0x154   : > { %v825_v52 = vadd.f32 %v1681_v25, %v824_v47  ;;  %v893_v53 = vadd.f32 %v892_v49, %v862_v48  ;;  %v867_v25 = vmul.f32 %v1703_v36, %v1703_v36  ;;  %vm916_vm0 = vcmp.eq.s32.totalorder %v915_v37, 0  ;;  %p1413_p12 = pnand %p1412_p8, %p1619_p13  ;;  %p1419_p3 = scmp.lt.s32.totalorder %s1417_s15, %s1411_s18 }
 0x155   : > { %vm918_vm1 = vcmp.eq.s32.totalorder %v915_v37, 1 }
 0x156   : > { %v894_v55 = vadd.f32 %v893_v53, %v863_v50  ;;  %v826_v57 = vadd.f32 %v1693_v29, %v825_v52  ;;  %v868_v29 = vmul.f32 %v1713_v46, %v1713_v46  ;;  %p1414_p0 = pneg %p1413_p12  ;;  %p1420_p5 = por %p1419_p3, %p1418_p2 }
 0x158   : > { %v827_v27 = vadd.f32 %v826_v57, %v1708_v41  ;;  %v895_v59 = vadd.f32 %v894_v55, %v864_v54  ;;  %p1421_p7 = pnand %p1420_p5, %p1414_p0 }
 0x15a   : > { %v896_v31 = vadd.f32 %v895_v59, %v865_v58  ;;  %v828_v60 = vadd.f32 %v827_v27, %v1718_v51 }
 0x15c   : > { %v829_v63 = vadd.f32 %v1703_v36, %v828_v60  ;;  %v897_v0 = vadd.f32 %v896_v31, %v866_v62  ;;  %v871_v36 = vmul.f32 %v1723_v56, %v1723_v56 }
 0x15e   : > { %v898_v1 = vadd.f32 %v897_v0, %v867_v25  ;;  %v830_v3 = vadd.f32 %v1713_v46, %v829_v63  ;;  %v872_v46 = vmul.f32 %v1733_v2, %v1733_v2 }
 0x160   : > { %v831_v41 = vadd.f32 %v830_v3, %v1728_v61  ;;  %v899_v5 = vadd.f32 %v898_v1, %v868_v29 }
 0x162   : > { %v900_v6 = vadd.f32 %v899_v5, %v869_v4  ;;  %v832_v51 = vadd.f32 %v831_v41, %v1738_v7 }
 0x164   : > { %v833_v9 = vadd.f32 %v1723_v56, %v832_v51  ;;  %v901_v10 = vadd.f32 %v900_v6, %v870_v8  ;;  %v875_v56 = vmul.f32 %v1743_v12, %v1743_v12 }
 0x166   : > { %v902_v11 = vadd.f32 %v901_v10, %v871_v36  ;;  %v834_v13 = vadd.f32 %v1733_v2, %v833_v9  ;;  %v876_v2 = vmul.f32 %v1755_v22, %v1755_v22 }
 0x168   : > { %v835_v61 = vadd.f32 %v834_v13, %v1750_v17  ;;  %v903_v15 = vadd.f32 %v902_v11, %v872_v46 }
 0x16a   : > { %v904_v16 = vadd.f32 %v903_v15, %v873_v14  ;;  %v836_v7 = vadd.f32 %v835_v61, %v1767_v30 }
 0x16c   : > { %v837_v19 = vadd.f32 %v1743_v12, %v836_v7  ;;  %v905_v20 = vadd.f32 %v904_v16, %v874_v18 }
 0x16e   : > { %v838_v21 = vadd.f32 %v1755_v22, %v837_v19  ;;  %v906_v17 = vadd.f32 %v905_v20, %v875_v56 }
 0x170   : > { %v839_v23 = vrot.slane %v838_v21, 4  ;;  %v907_v24 = vadd.f32 %v906_v17, %v876_v2 }
 0x172   : > { %v840_v26 = vadd.f32 %v839_v23, %v838_v21  ;;  %v908_v28 = vrot.slane %v907_v24, 4 }
 0x174   : > { %v841_v30 = vrot.slane %v840_v26, 2  ;;  %v909_v33 = vadd.f32 %v908_v28, %v907_v24 }
 0x176   : > { %v842_v34 = vadd.f32 %v841_v30, %v840_v26  ;;  %v910_v35 = vrot.slane %v909_v33, 2 }
 0x178   : > { %v843_v12 = vrot.slane %v842_v34, 1  ;;  %v911_v38 = vadd.f32 %v910_v35, %v909_v33 }
 0x17a   : > { %v844_v39 = vadd.f32 %v843_v12, %v842_v34  ;;  %v912_v40 = vrot.slane %v911_v38, 1 }
 0x17c   : > { %v913_v22 = vadd.f32 %v912_v40, %v911_v38  ;;  %v917_v42 = vsel %vm916_vm0, %v844_v39, 0.0 }
 0x17e   : > { %v919_v43 = vsel %vm918_vm1, %v913_v22, 0.0 }
 0x17f   : > { %v920_v44 = vadd.f32 %v919_v43, %v917_v42 }
 0x181   : > { %921 = vst [vmem:[%s251_s6] sm:$0xff] %v920_v44 }
 0x182   : > { %1424 = shalt.err (!%p1421_p7)
}
 0x183   : > { %s1425_s27 = scalar_lea.hbm %s957_s25, 128  ;;  %s1429_s22 = scalar_lea.hbm %s1887_s3, 256 }
 0x184   : > { %p1426_p4 = scmp.ne.s32.totalorder %s957_s25, %s1425_s27  ;;  %p1430_p11 = scmp.lt.s32.totalorder %s957_s25, %s1887_s3 }
 0x185   : > { %p1431_p10 = scmp.lt.s32.totalorder %s1429_s22, %s1425_s27 }
 0x186   : > { %p1427_p6 = pnand %p1426_p4, %p1619_p13 }
 0x187   : > { %p1432_p1 = por %p1431_p10, %p1430_p11 }
 0x188   : > { %p1428_p9 = pneg %p1427_p6 }
 0x18a   : > { %p1433_p8 = pnand %p1432_p1, %p1428_p9 }
 0x18c   : > { %1436 = shalt.err (!%p1433_p8)
}
 0x18d   : > { %1232 = dma.vmem_to_hbm [thread:$0]  (%p1619_p13), %s960_s21, 128, %s957_s25, %s928_s8  }
 0x18e PF: > { %s971_s30 = sand.u32 1, %s1479_s12   ;;  %p1903_p12 = scmp.ne.s32.totalorder %s1894_s23, 0 }
 0x18f   : > { %p1904_p0 = scmp.ge.s32.totalorder %s1499_s17, 2  ;;  %s972_s5 = scalar_lea.sflag [#allocation5], %s971_s30 }
 0x191   : > { %p1244_p2 = pnand %p1904_p0, %p1903_p12 }
 0x193   : > { %p1245_p3 = pneg %p1244_p2 }
 0x195   : > { %1470 = dma.done.wait (%p1245_p3), %s972_s5, 4096  }
 0x196   : > { %1472 = vsyncadd (%p1245_p3), %s972_s5, 4294963200  ;;  %s981_s6 = scalar_lea.sflag [#allocation10], %s971_s30 }
 0x197   : > { %1474 = dma.done.wait (%p1245_p3), %s981_s6, 128  }
 0x198   : > { %1476 = vsyncadd (%p1245_p3), %s981_s6, 4294967168  ;;  %s24_s17 = sadd.s32 1, %s1499_s17   ;;  %s1905_s12 = smov %s1483_s13 }
 0x199   : > { %p21_p5 = scmp.ge.s32.totalorder %s24_s17, 4   ;;  %s1906_s13 = smov %s1487_s14 }
 0x19a   : > { %s1907_s14 = smov %s1628_s19  ;;  %s1908_s15 = smov %s1495_s16 }
 0x19b   : > { %s1909_s16 = smov %s1911_s28  ;;  %23 = sbr.rel (!%p21_p5) target bundleno = 9 (0x9), region = 103 }
 0x1a0   :  { %986 = vsyncpa [#allocation4], 1 }
 0x1a1   :  { %988 = vsyncpa [#allocation4 + $0x1], 1 }
 0x1a2   :  { %989 = vsyncpa [#allocation7], 1 }
 0x1a3   :  { %990 = vsyncpa [#allocation5], 1 }
 0x1a4   :  { %992 = vsyncpa [#allocation5 + $0x1], 1 }
 0x1a5   :  { %993 = vsyncpa [#allocation10], 1 }
 0x1a6   :  { %995 = vsyncpa [#allocation10 + $0x1], 1 }

</bundles_post_ra>
